<compile_context>
chip_gen: v5e
topology: v5e:2x2
jax: 0.10.0
libtpu: 0.0.40
codegen_flags: <defaults>
</compile_context>

<pallas_src>
import jax
import jax.numpy as jnp
from jax import lax
from jax.experimental import pallas as pl
from jax.experimental.pallas import tpu as pltpu

EPS = 1e-6                       # matches the module's self.eps (NOT nn.BatchNorm's 1e-5)
_LANE = 128
_TARGET_BLOCK_BYTES = 2 << 20    # ~2 MiB input blocks already sit near the HBM roofline
_MIN_STEPS = 4                   # keep the pipeline busy / let v7x split across 2 TCs


def _batchnorm_kernel(x_ref, gamma_ref, beta_ref, o_ref):
    """Normalizes one (B, TILE_H) feature strip per grid step."""
    x = x_ref[...]                                              # [B, TILE_H], loaded once
    xf = x.astype(jnp.float32)                                  # no-op for f32 inputs
    n = xf.shape[0]
    mean = jnp.sum(xf, axis=0, keepdims=True) * (1.0 / n)       # [1, TILE_H]
    # torch.var default is unbiased (divide by N-1) — matches the module spec.
    # (B == 1 yields nan here, exactly like torch.var(unbiased=True) would.)
    centered = xf - mean                                        # only feeds the reduction
    var = jnp.sum(centered * centered, axis=0, keepdims=True) * (1.0 / (n - 1))
    inv = lax.rsqrt(var + EPS)                                  # EUP slot, once per feature
    scale = gamma_ref[...].astype(jnp.float32) * inv            # [1, TILE_H]
    bias = beta_ref[...].astype(jnp.float32) - mean * scale     # [1, TILE_H]
    if x.dtype == jnp.bfloat16:
        # v6e/v7x: packed bf16 VPU for the 2 per-element ops; reductions stayed in f32.
        o_ref[...] = (x * scale.astype(x.dtype) + bias.astype(x.dtype)).astype(o_ref.dtype)
    else:
        o_ref[...] = (xf * scale + bias).astype(o_ref.dtype)    # 2 VPU ops / element


def _pick_tile_h(B, H, itemsize):
    """Feature-tile width: ~2 MiB blocks, >=_MIN_STEPS grid steps when H allows."""
    # Budget covers the native input block plus its in-kernel f32 upcast.
    bytes_per_feature = max(B, 8) * (itemsize + 4)
    tile_h = max(_LANE, (_TARGET_BLOCK_BYTES // bytes_per_feature) // _LANE * _LANE)
    h_blocks = pl.cdiv(H, _LANE)
    if h_blocks >= _MIN_STEPS:
        # Cap the tile so the grid keeps at least _MIN_STEPS steps (pipelining + dual-TC).
        tile_h = min(tile_h, _LANE * pl.cdiv(h_blocks, _MIN_STEPS))
    if tile_h >= H:
        tile_h = H  # single full-extent block — always a legal block shape
    return tile_h


def batch_normalization(x, gamma, beta):
    """x: [B, H]; gamma, beta: [H].  BatchNorm over dim 0, unbiased var, eps=1e-6."""
    B, H = x.shape
    gamma2d = gamma.reshape(1, H)
    beta2d = beta.reshape(1, H)

    tile_h = _pick_tile_h(B, H, jnp.dtype(x.dtype).itemsize)
    grid = (pl.cdiv(H, tile_h),)   # ragged last block handled by Pallas (masked store)

    # TODO(synk): if B grows so large that one (B, 128) strip exceeds VMEM, switch to a
    # two-level grid (H_tiles, B_tiles) with f32 sum / sum-of-squares accumulators and a
    # pl.when init/finalize pass instead of relying on a single full-batch block.

    out = pl.pallas_call(
        _batchnorm_kernel,
        out_shape=jax.ShapeDtypeStruct((B, H), x.dtype),
        grid=grid,
        in_specs=[
            pl.BlockSpec((B, tile_h), lambda j: (0, j)),   # x strip
            pl.BlockSpec((1, tile_h), lambda j: (0, j)),   # gamma strip
            pl.BlockSpec((1, tile_h), lambda j: (0, j)),   # beta strip
        ],
        out_specs=pl.BlockSpec((B, tile_h), lambda j: (0, j)),
        compiler_params=pltpu.CompilerParams(
            # Feature-axis grid is embarrassingly parallel -> shards across the two
            # TensorCores on v7x; harmless on single-TC v5e/v6e.
            dimension_semantics=("parallel",),
        ),
    )(x, gamma2d, beta2d)
    return out


def _reference(x, gamma, beta):
    mean = x.mean(axis=0)
    var = x.var(axis=0, ddof=1)  # unbiased — matches torch.var default used by the module
    x_hat = (x - mean) / jnp.sqrt(var + EPS)
    return gamma * x_hat + beta


if __name__ == "__main__":
    key = jax.random.PRNGKey(0)
    B, H = 8, 32

    x = jax.random.normal(key, (B, H), dtype=jnp.float32)
    # Parameters initialized deterministically per the module's __init__:
    gamma = jnp.ones((H,), dtype=jnp.float32)
    beta = jnp.zeros((H,), dtype=jnp.float32)

    out = batch_normalization(x, gamma, beta)
    out = jax.block_until_ready(out)

    ref = _reference(x, gamma, beta)
    assert out.shape == (B, H)
    assert jnp.allclose(out, ref, atol=1e-5, rtol=1e-5), "mismatch vs reference"
    print("KERNEL_OK")
</pallas_src>

<mosaic_0001>
module attributes {stable_mosaic.version = 11 : i64} {
  func.func @_batchnorm_kernel(%arg0: i32, %arg1: memref<8x32xf32, #tpu.memory_space<vmem>>, %arg2: memref<1x32xf32, #tpu.memory_space<vmem>>, %arg3: memref<1x32xf32, #tpu.memory_space<vmem>>, %arg4: memref<8x32xf32, #tpu.memory_space<vmem>>) attributes {dimension_semantics = [#tpu.dimension_semantics<parallel>], iteration_bounds = array<i64: 1>, scalar_prefetch = 0 : i64, scratch_operands = 0 : i64, tpu.core_type = #tpu.core_type<tc>, window_params = [{transform_indices = @transform_0, window_bounds = array<i64: 8, 32>}, {transform_indices = @transform_1, window_bounds = array<i64: 1, 32>}, {transform_indices = @transform_2, window_bounds = array<i64: 1, 32>}, {transform_indices = @transform_3, window_bounds = array<i64: 8, 32>}]} {
    %c0 = arith.constant 0 : index
    %c0_0 = arith.constant 0 : index
    %0 = vector.load %arg1[%c0, %c0_0] : memref<8x32xf32, #tpu.memory_space<vmem>>, vector<8x32xf32>
    %cst = arith.constant dense<0.000000e+00> : vector<32xf32>
    %1 = vector.multi_reduction <add>, %0, %cst [0] : vector<8x32xf32> to vector<32xf32>
    %2 = vector.shape_cast %1 : vector<32xf32> to vector<1x32xf32>
    %cst_1 = arith.constant 1.250000e-01 : f32
    %3 = vector.broadcast %cst_1 : f32 to vector<1x32xf32>
    %4 = arith.mulf %2, %3 : vector<1x32xf32>
    %5 = vector.broadcast %4 : vector<1x32xf32> to vector<8x32xf32>
    %6 = arith.subf %0, %5 : vector<8x32xf32>
    %7 = arith.mulf %6, %6 : vector<8x32xf32>
    %cst_2 = arith.constant dense<0.000000e+00> : vector<32xf32>
    %8 = vector.multi_reduction <add>, %7, %cst_2 [0] : vector<8x32xf32> to vector<32xf32>
    %9 = vector.shape_cast %8 : vector<32xf32> to vector<1x32xf32>
    %cst_3 = arith.constant 0.142857149 : f32
    %10 = vector.broadcast %cst_3 : f32 to vector<1x32xf32>
    %11 = arith.mulf %9, %10 : vector<1x32xf32>
    %cst_4 = arith.constant 9.99999997E-7 : f32
    %12 = vector.broadcast %cst_4 : f32 to vector<1x32xf32>
    %13 = arith.addf %11, %12 : vector<1x32xf32>
    %14 = math.rsqrt %13 : vector<1x32xf32>
    %c0_5 = arith.constant 0 : index
    %c0_6 = arith.constant 0 : index
    %15 = vector.load %arg2[%c0_5, %c0_6] : memref<1x32xf32, #tpu.memory_space<vmem>>, vector<1x32xf32>
    %16 = arith.mulf %15, %14 : vector<1x32xf32>
    %c0_7 = arith.constant 0 : index
    %c0_8 = arith.constant 0 : index
    %17 = vector.load %arg3[%c0_7, %c0_8] : memref<1x32xf32, #tpu.memory_space<vmem>>, vector<1x32xf32>
    %18 = arith.mulf %4, %16 : vector<1x32xf32>
    %19 = arith.subf %17, %18 : vector<1x32xf32>
    %20 = vector.broadcast %16 : vector<1x32xf32> to vector<8x32xf32>
    %21 = arith.mulf %0, %20 : vector<8x32xf32>
    %22 = vector.broadcast %19 : vector<1x32xf32> to vector<8x32xf32>
    %23 = arith.addf %21, %22 : vector<8x32xf32>
    %c0_9 = arith.constant 0 : index
    %c0_10 = arith.constant 0 : index
    %24 = vector.load %arg4[%c0_9, %c0_10] : memref<8x32xf32, #tpu.memory_space<vmem>>, vector<8x32xf32>
    tpu.vector_store %arg4[%c0_9, %c0_10], %23 {strides = array<i32>} : memref<8x32xf32, #tpu.memory_space<vmem>>, vector<8x32xf32>,
    return
  }
  func.func @transform_0(%arg0: i32) -> (i32, i32) {
    %c0_i32 = arith.constant 0 : i32
    %c0_i32_0 = arith.constant 0 : i32
    return %c0_i32, %arg0 : i32, i32
  }
  func.func @transform_1(%arg0: i32) -> (i32, i32) {
    %c0_i32 = arith.constant 0 : i32
    %c0_i32_0 = arith.constant 0 : i32
    return %c0_i32, %arg0 : i32, i32
  }
  func.func @transform_2(%arg0: i32) -> (i32, i32) {
    %c0_i32 = arith.constant 0 : i32
    %c0_i32_0 = arith.constant 0 : i32
    return %c0_i32, %arg0 : i32, i32
  }
  func.func @transform_3(%arg0: i32) -> (i32, i32) {
    %c0_i32 = arith.constant 0 : i32
    %c0_i32_0 = arith.constant 0 : i32
    return %c0_i32, %arg0 : i32, i32
  }
}

</mosaic_0001>

<bundles_post_ra>
// kernel: tpu_custom_call.1
= control target key start
LH: loop header
LB: loop body
LE: loop exit
PB: predicated region body
PF: predicated region fallthrough
CT: control target
= control target key end

     0   :  { %8 = vsyncpa [#allocation3], 0  ;;  %s227_s0 = inlined_call_operand.hbm [shape: f32[8,32], index: 0, kind: input, shape index: {}]   ;;  %s228_s1 = inlined_call_operand.hbm [shape: f32[1,32], index: 1, kind: input, shape index: {}]   ;;  %s229_s2 = inlined_call_operand.vmem [shape: f32[1,32], index: 2, kind: input, shape index: {}]   ;;  %s230_s3 = inlined_call_operand.hbm [shape: f32[8,32], index: 3, kind: output, shape index: {}]  }
   0x1   :  { %9 = vsyncpa [#allocation6], 0 }
   0x2   :  { %10 = vsyncpa [#allocation4], 0  ;;  %s16_s14 = sshll.u32 %s227_s0, 4  ;;  %s189_s15 = smov [#allocation2]   ;;  %s17_s14 = int_to_ptr.hbm [resolvable:$true] %s16_s14 }
   0x3   :  { %s18_s16 = sshll.u32 %s189_s15, 4  ;;  %s27_s19 = sshll.u32 %s228_s1, 4  ;;  %s19_s16 = int_to_ptr.vmem [resolvable:$true] %s18_s16  ;;  %s28_s19 = int_to_ptr.hbm [resolvable:$true] %s27_s19 }
   0x4   :  { %21 = dma.hbm_to_vmem [thread:$0]  %s17_s14, 128, %s19_s16, [#allocation3]  }
   0x5   :  { %s190_s20 = smov [#allocation5]  }
   0x6   :  { %s29_s21 = sshll.u32 %s190_s20, 4  ;;  %s30_s21 = int_to_ptr.vmem [resolvable:$true] %s29_s21 }
   0x7   :  { %32 = dma.hbm_to_vmem [thread:$0]  %s28_s19, 16, %s30_s21, [#allocation6]  }
   0x8   :  { %183 = dma.done.wait [#allocation3], 128  }
   0x9   :  { %184 = vsyncadd [#allocation3], 4294967168 }
   0xa   :  { %185 = dma.done.wait [#allocation6], 16  }
   0xb   :  { %186 = vsyncadd [#allocation6], 4294967280  ;;  %vm44_vm0 = vcmask 261120   ;;  %v43_v0 = vld [vmem:[#allocation2] sm:$0xff]  ;;  %v74_v26 = vld [vmem:[#allocation5] sm:$0x1] }
   0xc   :  { %v45_v1 = vsel %vm44_vm0, %v43_v0, 0.0  ;;  %v76_v29 = vld [vmem:[%s229_s2] sm:$0x1]  ;;  %s191_s22 = smov [#allocation7]   ;;  %s95_s26 = sshll.u32 %s230_s3, 4  ;;  %s96_s26 = int_to_ptr.hbm [resolvable:$true] %s95_s26 }
   0xd   :  { %v46_v2 = vrot.slane %v45_v1, 4  ;;  %s93_s23 = sshll.u32 %s191_s22, 4  ;;  %s94_s23 = int_to_ptr.vmem [resolvable:$true] %s93_s23 }
   0xf   :  { %v47_v3 = vadd.f32 %v46_v2, %v45_v1 }
  0x11   :  { %v48_v4 = vrot.slane %v47_v3, 2 }
  0x13   :  { %v49_v5 = vadd.f32 %v48_v4, %v47_v3 }
  0x15   :  { %v50_v6 = vrot.slane %v49_v5, 1 }
  0x17   :  { %v51_v7 = vadd.f32 %v50_v6, %v49_v5 }
  0x19   :  { %v52_v8 = vmul.f32 0.125, %v51_v7 }
  0x1b   :  { %v53_v9 = vsub.f32 %v43_v0, %v52_v8 }
  0x1d   :  { %v54_v10 = vmul.f32 %v53_v9, %v53_v9 }
  0x1f   :  { %v55_v11 = vsel %vm44_vm0, %v54_v10, 0.0 }
  0x20   :  { %v56_v12 = vrot.slane %v55_v11, 4 }
  0x22   :  { %v57_v13 = vadd.f32 %v56_v12, %v55_v11 }
  0x24   :  { %v58_v14 = vrot.slane %v57_v13, 2 }
  0x26   :  { %v59_v15 = vadd.f32 %v58_v14, %v57_v13 }
  0x28   :  { %v60_v16 = vrot.slane %v59_v15, 1 }
  0x2a   :  { %v61_v17 = vadd.f32 %v60_v16, %v59_v15 }
  0x2c   :  { %v62_v18 = vmul.f32 0.14285715, %v61_v17 }
  0x2e   :  { %v63_v19 = vadd.f32 1e-06, %v62_v18 }
  0x30   :  { %109 = vrsqrt.f32 %v63_v19  ;;  %vm70_vm1 = vweird.f32 %v63_v19 }
  0x36   :  { %v110_v20 = vpop.eup %109 }
  0x37   :  { %v65_v21 = vmul.f32 %v110_v20, %v63_v19  ;;  %vm71_vm2 = vweird.f32 %v110_v20 }
  0x38   :  { %vm72_vm3 = vmor %vm70_vm1, %vm71_vm2 }
  0x39   :  { %v66_v22 = vmul.f32 %v110_v20, %v65_v21 }
  0x3b   :  { %v67_v23 = vmul.f32 0.5, %v66_v22 }
  0x3d   :  { %v68_v24 = vsub.f32 1.5, %v67_v23 }
  0x3f   :  { %v69_v25 = vmul.f32 %v110_v20, %v68_v24 }
  0x41   :  { %v73_v27 = vsel %vm72_vm3, %v110_v20, %v69_v25 }
  0x42   :  { %v75_v28 = vmul.f32 %v74_v26, %v73_v27 }
  0x44   :  { %v77_v30 = vmul.f32 %v75_v28, %v52_v8  ;;  %v80_v31 = vperm.slane %v75_v28, 0 }
  0x46   :  { %v78_v32 = vsub.f32 %v76_v29, %v77_v30  ;;  %v82_v33 = vmul.f32 %v80_v31, %v43_v0 }
  0x48   :  { %v84_v34 = vperm.slane %v78_v32, 0 }
  0x4a   :  { %v86_v35 = vadd.f32 %v84_v34, %v82_v33 }
  0x4c   :  { %87 = vst.msk [vmem:[#allocation7] sm:$0xff] %vm44_vm0, %v86_v35 }
  0x4d   :  { %98 = dma.vmem_to_hbm [thread:$0]  %s94_s23, 128, %s96_s26, [#allocation4]  }
  0x4e   :  { %187 = dma.done.wait [#allocation4], 128  }
  0x4f   :  { %188 = vsyncadd [#allocation4], 4294967168 }
  0x50   :  { %103 = vsyncpa [#allocation3], 1 }
  0x51   :  { %104 = vsyncpa [#allocation6], 1 }
  0x52   :  { %105 = vsyncpa [#allocation4], 1 }

</bundles_post_ra>
